<compile_context>
chip_gen: v7x
topology: tpu7x:2x2x1
jax: 0.10.0
libtpu: 0.0.40
codegen_flags: <defaults>
</compile_context>

<pallas_src>
import math

import jax
import jax.numpy as jnp
from jax import lax
from jax.experimental import pallas as pl
from jax.experimental.pallas import tpu as pltpu

LEAKY_SLOPE = 0.01
BN_EPS = 1e-5


def _round_up(x, m):
    return (x + m - 1) // m * m


def _conv_stats_kernel(p_ref, w_ref, sum_ref, sq_ref):
    """Pass 1: deep-K MXU matmul; emit only per-tile BN partial sums.

    p_ref:   (TM, Kf)  bf16 folded im2col patches (Kf = fold * 9*Cin)
    w_ref:   (Kf, L)   bf16 block-diagonal folded conv weights (L lane-dense)
    sum_ref: (8, L)    f32 sublane-group partial channel sums
    sq_ref:  (8, L)    f32 sublane-group partial channel sums of squares
    """
    y = jnp.dot(p_ref[...], w_ref[...], preferred_element_type=jnp.float32)
    # (TM, L) -> (TM/8, 8, L): vreg-aligned groups; leading-dim sum = VPU adds.
    yg = y.reshape(-1, 8, y.shape[-1])
    sum_ref[...] = jnp.sum(yg, axis=0)
    sq_ref[...] = jnp.sum(yg * yg, axis=0)


def _conv_bn_act_kernel(p_ref, w_ref, scale_ref, shift_ref, o_ref):
    """Pass 2: recompute the conv matmul fused with BN affine + LeakyReLU.

    p_ref:     (TM, Kf) bf16
    w_ref:     (Kf, L)  bf16
    scale_ref: (1, L)   f32   gamma * rsqrt(var + eps)   (lane-folded)
    shift_ref: (1, L)   f32   beta - scale * mean        (lane-folded)
    o_ref:     (TM, L)  f32   lane-dense output slab
    """
    y = jnp.dot(p_ref[...], w_ref[...], preferred_element_type=jnp.float32)
    z = y * scale_ref[...] + shift_ref[...]
    o_ref[...] = jnp.where(z > 0, z, LEAKY_SLOPE * z)


def discrim_block(x_nchw, weight, bias, gamma, beta, *, stride):
    """Forward pass matching PyTorch Discrim_Block (training-mode BatchNorm).

    x_nchw: (N, Cin, H, W) f32
    weight: (Cout, Cin, 3, 3); bias/gamma/beta: (Cout,)
    returns: (N, Cout, Hout, Wout) f32
    """
    del bias  # cancels exactly under training-mode BatchNorm (mean subtraction)

    n, cin, h, w = x_nchw.shape
    cout = weight.shape[0]
    hout = (h - 3) // stride + 1
    wout = (w - 3) // stride + 1
    m = n * hout * wout
    k = 9 * cin

    # Spatial->lane fold so the output slab is lane-dense (no 16x channel pad).
    if cout >= 128:
        fold = 1
    else:
        fold = 128 // math.gcd(cout, 128)        # fold*cout is a multiple of 128
    lanes = _round_up(fold * cout, 128)
    kf = fold * k

    # --- wrapper-side im2col (stride handled here, once) ----------------------
    # TODO(synk): for stride=1 / large Cin an in-kernel gather (DMA shifted row
    # blocks + pltpu.roll) would avoid materializing the 9x-duplicated patches.
    x_nhwc = jnp.transpose(x_nchw, (0, 2, 3, 1)).astype(jnp.bfloat16)
    cols = []
    for kh in range(3):
        for kw in range(3):
            cols.append(lax.slice(
                x_nhwc,
                (0, kh, kw, 0),
                (n, kh + stride * (hout - 1) + 1,
                 kw + stride * (wout - 1) + 1, cin),
                (1, stride, stride, 1)))          # (N, Hout, Wout, Cin)
    patches = jnp.concatenate(cols, axis=-1).reshape(m, k)   # bf16 (M, 9*Cin)

    # (Cout, Cin, 3, 3) -> (9*Cin, Cout) -> block-diagonal folded (Kf, lanes).
    w2 = jnp.transpose(weight, (2, 3, 1, 0)).reshape(k, cout).astype(jnp.bfloat16)
    w_fold = jnp.kron(jnp.eye(fold, dtype=jnp.bfloat16), w2)   # (Kf, fold*Cout)
    w_fold = jnp.pad(w_fold, ((0, 0), (0, lanes - fold * cout)))

    # --- tile sizing (VMEM-budget driven; >=2 tiles when possible for v7x) -----
    m_fold = pl.cdiv(m, fold)
    weight_bytes = 2 * kf * lanes * 2                 # resident weight (x2 bufs)
    per_row_bytes = 4 * kf + 8 * lanes                # patches bf16 x2 + out f32 x2
    budget = 12 << 20                                 # per-step working-set budget
    tm = max(8, min(1024, (max(budget - weight_bytes, 0) // per_row_bytes) // 8 * 8))
    m8 = _round_up(m_fold, 8)
    if tm >= m8:
        tm = m8 if m8 < 16 else _round_up(pl.cdiv(m8, 2), 8)
    rows_pad = _round_up(m_fold, tm)
    num_tiles = rows_pad // tm

    # Pad positions to rows_pad*fold (zero rows -> zero conv output -> exact
    # stats when dividing by the true M) and fold spatial into lanes/K.
    patches = jnp.pad(patches, ((0, rows_pad * fold - m), (0, 0)))
    patches = patches.reshape(rows_pad, kf)

    footprint = (2 * tm * kf * 2 + weight_bytes + 2 * tm * lanes * 4
                 + 4 * 8 * lanes * 4)
    cparams = pltpu.CompilerParams(
        dimension_semantics=("parallel",),
        vmem_limit_bytes=int(min(max(2 * footprint, 32 << 20), 64 << 20)),
    )

    # --- pass 1: conv matmul + per-tile BN partial statistics (no y in HBM) ---
    psum, psq = pl.pallas_call(
        _conv_stats_kernel,
        grid=(num_tiles,),
        in_specs=[
            pl.BlockSpec((tm, kf), lambda i: (i, 0)),
            pl.BlockSpec((kf, lanes), lambda i: (0, 0)),
        ],
        out_specs=[
            pl.BlockSpec((8, lanes), lambda i: (i, 0)),
            pl.BlockSpec((8, lanes), lambda i: (i, 0)),
        ],
        out_shape=[
            jax.ShapeDtypeStruct((num_tiles * 8, lanes), jnp.float32),
            jax.ShapeDtypeStruct((num_tiles * 8, lanes), jnp.float32),
        ],
        compiler_params=cparams,
    )(patches, w_fold)

    # --- tiny per-channel stat finalization (O(Cout) work, f32) ----------------
    # TODO(synk): E[x^2]-mean^2 can cancel for |mean|>>std; use Welford-style
    # partials for production shapes if that regime matters.
    denom = jnp.float32(m)
    lane_sum = jnp.sum(psum, axis=0)[: fold * cout].reshape(fold, cout)
    lane_sq = jnp.sum(psq, axis=0)[: fold * cout].reshape(fold, cout)
    mean = jnp.sum(lane_sum, axis=0) / denom
    var = jnp.maximum(jnp.sum(lane_sq, axis=0) / denom - mean * mean, 0.0)
    scale_c = gamma.astype(jnp.float32) * lax.rsqrt(var + BN_EPS)
    shift_c = beta.astype(jnp.float32) - scale_c * mean
    scale = jnp.pad(jnp.tile(scale_c, fold), (0, lanes - fold * cout)).reshape(1, lanes)
    shift = jnp.pad(jnp.tile(shift_c, fold), (0, lanes - fold * cout)).reshape(1, lanes)

    # --- pass 2: recompute conv, fused BN affine (FMA) + LeakyReLU -------------
    out = pl.pallas_call(
        _conv_bn_act_kernel,
        grid=(num_tiles,),
        in_specs=[
            pl.BlockSpec((tm, kf), lambda i: (i, 0)),
            pl.BlockSpec((kf, lanes), lambda i: (0, 0)),
            pl.BlockSpec((1, lanes), lambda i: (0, 0)),
            pl.BlockSpec((1, lanes), lambda i: (0, 0)),
        ],
        out_specs=pl.BlockSpec((tm, lanes), lambda i: (i, 0)),
        out_shape=jax.ShapeDtypeStruct((rows_pad, lanes), jnp.float32),
        compiler_params=cparams,
    )(patches, w_fold, scale, shift)

    # --- unfold lanes -> channels, drop padding, NHWC -> NCHW ------------------
    # TODO(synk): the un-fold + NCHW transpose is an extra XLA pass; return NHWC
    # (or fold the layout into the out_spec) if the consumer allows it.
    out = out[:, : fold * cout].reshape(rows_pad * fold, cout)[:m]
    out = out.reshape(n, hout, wout, cout)
    return jnp.transpose(out, (0, 3, 1, 2))


def _reference(x_nchw, weight, bias, gamma, beta, *, stride):
    """Plain-JAX f32 reference (includes the conv bias; it cancels in BN)."""
    y = lax.conv_general_dilated(
        x_nchw, weight, window_strides=(stride, stride), padding="VALID",
        dimension_numbers=("NCHW", "OIHW", "NCHW"),
        precision=lax.Precision.HIGHEST,
    ) + bias[None, :, None, None]
    mean = jnp.mean(y, axis=(0, 2, 3), keepdims=True)
    var = jnp.mean((y - mean) ** 2, axis=(0, 2, 3), keepdims=True)
    z = gamma[None, :, None, None] * (y - mean) * lax.rsqrt(var + BN_EPS) \
        + beta[None, :, None, None]
    return jnp.where(z > 0, z, LEAKY_SLOPE * z)


if __name__ == "__main__":
    # Small shapes consistent with the module: N=2, Cin=4, H=W=16, Cout=8, stride=2.
    N, CIN, H, W = 2, 4, 16, 16
    COUT, STRIDE = 8, 2

    key = jax.random.PRNGKey(0)
    kx, kw, kb, kg, kbe = jax.random.split(key, 5)
    x = jax.random.normal(kx, (N, CIN, H, W), dtype=jnp.float32)
    weight = 0.1 * jax.random.normal(kw, (COUT, CIN, 3, 3), dtype=jnp.float32)
    bias = 0.1 * jax.random.normal(kb, (COUT,), dtype=jnp.float32)
    gamma = 1.0 + 0.05 * jax.random.normal(kg, (COUT,), dtype=jnp.float32)
    beta = 0.05 * jax.random.normal(kbe, (COUT,), dtype=jnp.float32)

    out = discrim_block(x, weight, bias, gamma, beta, stride=STRIDE)
    out = jax.block_until_ready(out)

    ref = _reference(x, weight, bias, gamma, beta, stride=STRIDE)
    hout = (H - 3) // STRIDE + 1
    assert out.shape == ref.shape == (N, COUT, hout, hout)
    # bf16 matmul inputs (f32 accumulation) vs f32-HIGHEST reference.
    max_err = jnp.max(jnp.abs(out - ref))
    assert jnp.allclose(out, ref, rtol=2e-2, atol=2e-2), f"max abs err {max_err}"

    print("KERNEL_OK")
</pallas_src>

<mosaic_0001>
module attributes {stable_mosaic.version = 11 : i64} {
  func.func @_conv_stats_kernel(%arg0: i32, %arg1: memref<8x576xbf16, #tpu.memory_space<vmem>>, %arg2: memref<576x128xbf16, #tpu.memory_space<vmem>>, %arg3: memref<8x128xf32, #tpu.memory_space<vmem>>, %arg4: memref<8x128xf32, #tpu.memory_space<vmem>>) attributes {dimension_semantics = [#tpu.dimension_semantics<parallel>], iteration_bounds = array<i64: 1>, scalar_prefetch = 0 : i64, scratch_operands = 0 : i64, tpu.core_type = #tpu.core_type<tc>, window_params = [{transform_indices = @transform_0, window_bounds = array<i64: 8, 576>}, {pipeline_mode = #tpu.pipeline_mode<synchronous>, transform_indices = @transform_1, window_bounds = array<i64: 576, 128>}, {transform_indices = @transform_2, window_bounds = array<i64: 8, 128>}, {transform_indices = @transform_3, window_bounds = array<i64: 8, 128>}]} {
    %c0 = arith.constant 0 : index
    %c0_0 = arith.constant 0 : index
    %0 = vector.load %arg1[%c0, %c0_0] : memref<8x576xbf16, #tpu.memory_space<vmem>>, vector<8x576xbf16>
    %c0_1 = arith.constant 0 : index
    %c0_2 = arith.constant 0 : index
    %1 = vector.load %arg2[%c0_1, %c0_2] : memref<576x128xbf16, #tpu.memory_space<vmem>>, vector<576x128xbf16>
    %cst = arith.constant dense<0.000000e+00> : vector<8x128xf32>
    %2 = tpu.matmul %0, %1, %cst {dimension_numbers = #tpu.dot_dimension_numbers<[1], [0], [0], [1], [0, 0, 1, 1], [], []>} : vector<8x576xbf16>, vector<576x128xbf16>, vector<8x128xf32> -> vector<8x128xf32>
    %3 = vector.shape_cast %2 : vector<8x128xf32> to vector<1x8x128xf32>
    %cst_3 = arith.constant dense<0.000000e+00> : vector<8x128xf32>
    %4 = vector.multi_reduction <add>, %3, %cst_3 [0] : vector<1x8x128xf32> to vector<8x128xf32>
    %c0_4 = arith.constant 0 : index
    %c0_5 = arith.constant 0 : index
    %5 = vector.load %arg3[%c0_4, %c0_5] : memref<8x128xf32, #tpu.memory_space<vmem>>, vector<8x128xf32>
    tpu.vector_store %arg3[%c0_4, %c0_5], %4 {strides = array<i32>} : memref<8x128xf32, #tpu.memory_space<vmem>>, vector<8x128xf32>,
    %6 = arith.mulf %3, %3 : vector<1x8x128xf32>
    %cst_6 = arith.constant dense<0.000000e+00> : vector<8x128xf32>
    %7 = vector.multi_reduction <add>, %6, %cst_6 [0] : vector<1x8x128xf32> to vector<8x128xf32>
    %c0_7 = arith.constant 0 : index
    %c0_8 = arith.constant 0 : index
    %8 = vector.load %arg4[%c0_7, %c0_8] : memref<8x128xf32, #tpu.memory_space<vmem>>, vector<8x128xf32>
    tpu.vector_store %arg4[%c0_7, %c0_8], %7 {strides = array<i32>} : memref<8x128xf32, #tpu.memory_space<vmem>>, vector<8x128xf32>,
    return
  }
  func.func @transform_0(%arg0: i32) -> (i32, i32) {
    %c0_i32 = arith.constant 0 : i32
    %c0_i32_0 = arith.constant 0 : i32
    return %arg0, %c0_i32 : i32, i32
  }
  func.func @transform_1(%arg0: i32) -> (i32, i32) {
    %c0_i32 = arith.constant 0 : i32
    %c0_i32_0 = arith.constant 0 : i32
    %c0_i32_1 = arith.constant 0 : i32
    return %c0_i32, %c0_i32_0 : i32, i32
  }
  func.func @transform_2(%arg0: i32) -> (i32, i32) {
    %c0_i32 = arith.constant 0 : i32
    %c0_i32_0 = arith.constant 0 : i32
    return %arg0, %c0_i32 : i32, i32
  }
  func.func @transform_3(%arg0: i32) -> (i32, i32) {
    %c0_i32 = arith.constant 0 : i32
    %c0_i32_0 = arith.constant 0 : i32
    return %arg0, %c0_i32 : i32, i32
  }
}

</mosaic_0001>

<bundles_post_ra>
// kernel: tpu_custom_call.1
= control target key start
LH: loop header
LB: loop body
LE: loop exit
PB: predicated region body
PF: predicated region fallthrough
CT: control target
= control target key end

     0   :  { %9 = vsyncpa [#allocation3], 0  ;;  %s840_s0 = inlined_call_operand.hbm [shape: bf16[8,576], index: 0, kind: input, shape index: {}]   ;;  %s841_s1 = inlined_call_operand.hbm [shape: bf16[576,128], index: 1, kind: input, shape index: {}]   ;;  %s842_s2 = inlined_call_operand.hbm [shape: f32[8,128], index: 2, kind: output, shape index: {0}]   ;;  %s843_s3 = inlined_call_operand.hbm [shape: f32[8,128], index: 3, kind: output, shape index: {1}]  }
   0x1   :  { %10 = vsyncpa [#allocation6], 0 }
   0x2   :  { %11 = vsyncpa [#allocation4], 0 }
   0x3   :  { %12 = vsyncpa [#allocation9], 0  ;;  %s757_s12 = smov [#allocation2]   ;;  %s758_s14 = smov [#allocation5]  }
   0x4   :  { %s19_s13 = sshll.u32 %s757_s12, 4  ;;  %s28_s15 = sshll.u32 %s758_s14, 4  ;;  %s20_s13 = int_to_ptr.vmem [resolvable:$true] %s19_s13  ;;  %s785_s15 = int_to_ptr.vmem [resolvable:$true] %s28_s15 }
   0x5   :  { %s661_s18 = scalar_lea.hbm %s840_s0, 320 }
   0x6   :  { %p662_p0 = scmp.ne.s32.totalorder %s840_s0, %s661_s18  ;;  %p665_p1 = scmp.lt.u32.totalorder %s661_s18, %s840_s0 }
   0x8   :  { %p667_p2 = pnand %p665_p1, %p662_p0 }
   0xa   :  { %670 = shalt.err (!%p667_p2)
}
   0xb   :  { %s671_s23 = scalar_lea.vmem %s20_s13, 320  ;;  %p676_p4 = scmp.lt.s32.totalorder %s20_s13, %s20_s13 }
   0xc   :  { %p672_p3 = scmp.ne.s32.totalorder %s20_s13, %s671_s23  ;;  %p677_p5 = scmp.lt.s32.totalorder %s671_s23, %s671_s23 }
   0xe   :  { %p678_p6 = por %p677_p5, %p676_p4 }
  0x10   :  { %p679_p7 = pnand %p678_p6, %p672_p3 }
  0x12   :  { %682 = shalt.err (!%p679_p7)
}
  0x13   :  { %22 = dma.hbm_to_vmem [thread:$0]  %s840_s0, 320, %s20_s13, [#allocation3]  }
  0x14   :  { %s683_s28 = scalar_lea.hbm %s841_s1, 4608 }
  0x15   :  { %p684_p8 = scmp.ne.s32.totalorder %s841_s1, %s683_s28  ;;  %p687_p9 = scmp.lt.u32.totalorder %s683_s28, %s841_s1 }
  0x17   :  { %p689_p10 = pnand %p687_p9, %p684_p8 }
  0x19   :  { %692 = shalt.err (!%p689_p10)
}
  0x1a   :  { %s693_s6 = scalar_lea.vmem %s785_s15, 4608  ;;  %p698_p12 = scmp.lt.s32.totalorder %s785_s15, %s785_s15 }
  0x1b   :  { %p694_p11 = scmp.ne.s32.totalorder %s785_s15, %s693_s6  ;;  %p699_p13 = scmp.lt.s32.totalorder %s693_s6, %s693_s6 }
  0x1d   :  { %p700_p0 = por %p699_p13, %p698_p12 }
  0x1f   :  { %p701_p1 = pnand %p700_p0, %p694_p11 }
  0x21   :  { %704 = shalt.err (!%p701_p1)
}
  0x22   :  { %s759_s0 = smov 64   ;;  %s760_s7 = smov 4  }
  0x23   :  { %34 = dma.hbm_to_vmem [thread:$0]  %s841_s1, 4608, %s785_s15, [#allocation6], %s759_s0, %s759_s0, %s760_s7  }
  0x24   :  { %749 = dma.done.wait [#allocation3], 320  }
  0x25   :  { %750 = vsyncadd [#allocation3], 4294966976 }
  0x26   :  { %751 = dma.done.wait [#allocation6], 4608  }
  0x27   :  { %752 = vsyncadd [#allocation6], 4294962688  ;;  %v620_v0 = vld [vmem:[#allocation5 + $0x40] sm:$0xff]   ;;  %v624_v4 = vld [vmem:[#allocation5 + $0x48] sm:$0xff]   ;;  %v761_v39 = vmov 0.0   ;;  %vm762_vm0 = vmmov 0  }
  0x28   :  { %v621_v1 = vld [vmem:[#allocation5 + $0xc0] sm:$0xff]   ;;  %551 = vmatprep.subr.bf16.mxu0 %v620_v0  ;;  %v625_v5 = vld [vmem:[#allocation5 + $0xc8] sm:$0xff]   ;;  %v628_v8 = vld [vmem:[#allocation5 + $0x50] sm:$0xff]   ;;  %vm350_vm1 = vcmask 523264   ;;  %s763_s1 = smov [#allocation7]   ;;  %s764_s11 = smov [#allocation8]  }
  0x29   :  { %v622_v2 = vld [vmem:[#allocation5] sm:$0xff]   ;;  %573 = vmatprep.subr.bf16.mxu1 %v621_v1  ;;  %v626_v6 = vld [vmem:[#allocation5 + $0x8] sm:$0xff]   ;;  %v629_v9 = vld [vmem:[#allocation5 + $0xd0] sm:$0xff]   ;;  %s485_s10 = sshll.u32 %s763_s1, 4  ;;  %s495_s12 = sshll.u32 %s764_s11, 4  ;;  %s486_s10 = int_to_ptr.vmem [resolvable:$true] %s485_s10  ;;  %s496_s12 = int_to_ptr.vmem [resolvable:$true] %s495_s12 }
  0x2a   :  { %v623_v3 = vld [vmem:[#allocation5 + $0x80] sm:$0xff]   ;;  %552 = vmatpush3.bf16.msra.mxu0 %v622_v2  ;;  %v627_v7 = vld [vmem:[#allocation5 + $0x88] sm:$0xff]   ;;  %v630_v10 = vld [vmem:[#allocation5 + $0x10] sm:$0xff]   ;;  %s705_s13 = scalar_lea.vmem %s486_s10, 128  ;;  %p710_p3 = scmp.lt.s32.totalorder %s486_s10, %s486_s10 }
  0x2b   :  { %574 = vmatpush3.bf16.msra.mxu1 %v623_v3  ;;  %553 = vmatprep.subr.bf16.mxu0 %v624_v4  ;;  %v631_v11 = vld [vmem:[#allocation5 + $0x90] sm:$0xff]   ;;  %v632_v12 = vld [vmem:[#allocation5 + $0x58] sm:$0xff]   ;;  %v636_v16 = vld [vmem:[#allocation5 + $0x60] sm:$0xff]   ;;  %p706_p2 = scmp.ne.s32.totalorder %s486_s10, %s705_s13  ;;  %p711_p4 = scmp.lt.s32.totalorder %s705_s13, %s705_s13 }
  0x2c   :  { %575 = vmatprep.subr.bf16.mxu1 %v625_v5  ;;  %v633_v13 = vld [vmem:[#allocation5 + $0xd8] sm:$0xff]   ;;  %v637_v17 = vld [vmem:[#allocation5 + $0xe0] sm:$0xff]   ;;  %v640_v20 = vld [vmem:[#allocation5 + $0x68] sm:$0xff]  }
  0x2d   :  { %v634_v14 = vld [vmem:[#allocation5 + $0x18] sm:$0xff]   ;;  %v638_v18 = vld [vmem:[#allocation5 + $0x20] sm:$0xff]   ;;  %v641_v21 = vld [vmem:[#allocation5 + $0xe8] sm:$0xff]   ;;  %p712_p5 = por %p711_p4, %p710_p3 }
  0x2e   :  { %554 = vmatpush3.bf16.msra.mxu0 %v626_v6  ;;  %v635_v15 = vld [vmem:[#allocation5 + $0x98] sm:$0xff]   ;;  %v639_v19 = vld [vmem:[#allocation5 + $0xa0] sm:$0xff]   ;;  %v642_v22 = vld [vmem:[#allocation5 + $0x28] sm:$0xff]  }
  0x2f   :  { %576 = vmatpush3.bf16.msra.mxu1 %v627_v7  ;;  %555 = vmatprep.subr.bf16.mxu0 %v628_v8  ;;  %v643_v23 = vld [vmem:[#allocation5 + $0xa8] sm:$0xff]   ;;  %v644_v24 = vld [vmem:[#allocation5 + $0x70] sm:$0xff]   ;;  %v648_v28 = vld [vmem:[#allocation5 + $0x78] sm:$0xff]   ;;  %p713_p6 = pnand %p712_p5, %p706_p2 }
  0x30   :  { %577 = vmatprep.subr.bf16.mxu1 %v629_v9  ;;  %v645_v25 = vld [vmem:[#allocation5 + $0xf0] sm:$0xff]   ;;  %v649_v29 = vld [vmem:[#allocation5 + $0xf8] sm:$0xff]   ;;  %v656_v38 = vld [vmem:[#allocation5 + $0x100] sm:$0xff]  }
  0x31   :  { %v646_v26 = vld [vmem:[#allocation5 + $0x30] sm:$0xff]   ;;  %v650_v30 = vld [vmem:[#allocation5 + $0x38] sm:$0xff]   ;;  %v657_v40 = vld [vmem:[#allocation5 + $0x108] sm:$0xff]  }
  0x32   :  { %556 = vmatpush3.bf16.msra.mxu0 %v630_v10  ;;  %v647_v27 = vld [vmem:[#allocation5 + $0xb0] sm:$0xff]   ;;  %v651_v31 = vld [vmem:[#allocation5 + $0xb8] sm:$0xff]  }
  0x33   :  { %578 = vmatpush3.bf16.msra.mxu1 %v631_v11  ;;  %557 = vmatprep.subr.bf16.mxu0 %v632_v12  ;;  %v42_v32 = vld [vmem:[#allocation2] sm:$0xff]  ;;  %v43_v33 = vld [vmem:[#allocation2 + $0x8] sm:$0xff]  ;;  %v660_v43 = vld [vmem:[#allocation2 + $0x10] ss:$0 sps:$4 sm:$0xff]  }
  0x34   :  { %579 = vmatprep.subr.bf16.mxu1 %v633_v13  ;;  %v509_v34 = vcombine.low %v42_v32, %v42_v32  ;;  %v510_v35 = vcombine.high %v42_v32, %v42_v32  ;;  %v511_v36 = vcombine.low %v43_v33, %v43_v33  ;;  %v512_v37 = vcombine.high %v43_v33, %v43_v33  ;;  %v658_v41 = vld [vmem:[#allocation5 + $0x110] sm:$0xff]   ;;  %v659_v42 = vld [vmem:[#allocation5 + $0x118] sm:$0xff]  }
  0x36   :  { %558 = vmatpush3.bf16.msra.mxu0 %v634_v14  ;;  %386 = vmatprep.mubr.bf16.mxu0 %v510_v35 }
  0x37   :  { %580 = vmatpush3.bf16.msra.mxu1 %v635_v15  ;;  %559 = vmatprep.subr.bf16.mxu0 %v636_v16 }
  0x38   :  { %581 = vmatprep.subr.bf16.mxu1 %v637_v17  ;;  %426 = vmatprep.mubr.bf16.mxu1 %v512_v37 }
  0x3a   :  { %560 = vmatpush3.bf16.msra.mxu0 %v638_v18 }
  0x3b   :  { %582 = vmatpush3.bf16.msra.mxu1 %v639_v19  ;;  %561 = vmatprep.subr.bf16.mxu0 %v640_v20 }
  0x3c   :  { %583 = vmatprep.subr.bf16.mxu1 %v641_v21 }
  0x3e   :  { %562 = vmatpush3.bf16.msra.mxu0 %v642_v22 }
  0x3f   :  { %584 = vmatpush3.bf16.msra.mxu1 %v643_v23  ;;  %563 = vmatprep.subr.bf16.mxu0 %v644_v24 }
  0x40   :  { %585 = vmatprep.subr.bf16.mxu1 %v645_v25 }
  0x42   :  { %564 = vmatpush3.bf16.msra.mxu0 %v646_v26 }
  0x43   :  { %586 = vmatpush3.bf16.msra.mxu1 %v647_v27  ;;  %565 = vmatprep.subr.bf16.mxu0 %v648_v28 }
  0x44   :  { %587 = vmatprep.subr.bf16.mxu1 %v649_v29 }
  0x46   :  { %566 = vmatpush3.bf16.msra.mxu0 %v650_v30 }
  0x47   :  { %588 = vmatpush3.bf16.msra.mxu1 %v651_v31  ;;  %600 = vmatprep.subr.bf16.mxu0 %v761_v39 }
  0x49   :  { %387 = vmatmul.mubr.bf16.vlgmr.msra.gmra.mrb[0].mxu0 %v509_v34 }
  0x4a   :  { %427 = vmatmul.mubr.bf16.vlgmr.msra.gmra.mrb[0].mxu1 %v511_v36  ;;  %601 = vmatpush3.bf16.msra.mxu0 %v656_v38 }
  0x4b   :  { %608 = vmatprep.mubr.msk.bf16.mxu0 %vm762_vm0, %v761_v39  ;;  %602 = vmatprep.subr.bf16.mxu0 %v761_v39 }
  0x4e   :  { %603 = vmatpush3.bf16.msra.mxu0 %v657_v40 }
  0x4f   :  { %604 = vmatprep.subr.bf16.mxu0 %v761_v39 }
  0x52   :  { %605 = vmatpush3.bf16.msra.mxu0 %v658_v41 }
  0x53   :  { %606 = vmatprep.subr.bf16.mxu0 %v761_v39 }
  0x56   :  { %607 = vmatpush3.bf16.msra.mxu0 %v659_v42 }
  0x59   :  { %609 = vmatmul.mubr.msk.bf16.vlgmr.msra.gmra.mrb[4].mxu0 %vm350_vm1, %v660_v43 }
 0x11c   :  { %v567_v44 = vpop.f32.mrb[0].mxu0 }
 0x11d   :  { %v589_v45 = vpop.f32.mrb[0].mxu1  ;;  %v568_v46 = vpop.f32.mrb[1].mxu0 }
 0x11e   :  { %v590_v47 = vpop.f32.mrb[1].mxu1  ;;  %v569_v48 = vadd.f32 %v568_v46, %v567_v44  ;;  %v570_v50 = vpop.f32.mrb[2].mxu0 }
 0x11f   :  { %v591_v49 = vadd.f32 %v590_v47, %v589_v45  ;;  %v592_v51 = vpop.f32.mrb[2].mxu1  ;;  %v571_v52 = vpop.f32.mrb[3].mxu0 }
 0x120   :  { %v593_v53 = vpop.f32.mrb[3].mxu1 }
 0x121   :  { %v429_v54 = vadd.f32 %v591_v49, %v569_v48 }
 0x12c   :  { %v468_v55 = vpop.f32.mrb[4].mxu0 }
 0x12d   :  { %v469_v56 = vadd.f32 %v468_v55, %v429_v54  ;;  %v610_v57 = vpop.f32.mrb[5].mxu0 }
 0x12e   :  { %v471_v58 = vpop.f32.mrb[6].mxu0 }
 0x12f   :  { %v476_v59 = vmul.f32 %v469_v56, %v469_v56  ;;  %475 = vst [vmem:[#allocation7] sm:$0xff] %v469_v56  ;;  %v611_v60 = vpop.f32.mrb[7].mxu0 }
 0x130   :  { %716 = shalt.err (!%p713_p6)
}
 0x131   :  { %s717_s16 = scalar_lea.hbm %s842_s2, 128 }
 0x132   :  { %p718_p7 = scmp.ne.s32.totalorder %s842_s2, %s717_s16  ;;  %p721_p8 = scmp.lt.u32.totalorder %s717_s16, %s842_s2 }
 0x134   :  { %p723_p9 = pnand %p721_p8, %p718_p7 }
 0x136   :  { %726 = shalt.err (!%p723_p9)
}
 0x137   :  { %488 = dma.vmem_to_hbm [thread:$0]  %s486_s10, 128, %s842_s2, [#allocation4]   ;;  %478 = vst [vmem:[#allocation8] sm:$0xff] %v476_v59 }
 0x138   :  { %s727_s23 = scalar_lea.vmem %s496_s12, 128  ;;  %p732_p11 = scmp.lt.s32.totalorder %s496_s12, %s496_s12 }
 0x139   :  { %p728_p10 = scmp.ne.s32.totalorder %s496_s12, %s727_s23  ;;  %p733_p12 = scmp.lt.s32.totalorder %s727_s23, %s727_s23 }
 0x13b   :  { %p734_p13 = por %p733_p12, %p732_p11 }
 0x13d   :  { %p735_p0 = pnand %p734_p13, %p728_p10 }
 0x13f   :  { %738 = shalt.err (!%p735_p0)
}
 0x140   :  { %s739_s26 = scalar_lea.hbm %s843_s3, 128 }
 0x141   :  { %p740_p1 = scmp.ne.s32.totalorder %s843_s3, %s739_s26  ;;  %p743_p2 = scmp.lt.u32.totalorder %s739_s26, %s843_s3 }
 0x143   :  { %p745_p3 = pnand %p743_p2, %p740_p1 }
 0x145   :  { %748 = shalt.err (!%p745_p3)
}
 0x146   :  { %498 = dma.vmem_to_hbm [thread:$0]  %s496_s12, 128, %s843_s3, [#allocation9]  }
 0x147   :  { %753 = dma.done.wait [#allocation4], 128  }
 0x148   :  { %754 = vsyncadd [#allocation4], 4294967168 }
 0x149   :  { %755 = dma.done.wait [#allocation9], 128  }
 0x14a   :  { %756 = vsyncadd [#allocation9], 4294967168 }
 0x14b   :  { %505 = vsyncpa [#allocation3], 1 }
 0x14c   :  { %506 = vsyncpa [#allocation6], 1 }
 0x14d   :  { %507 = vsyncpa [#allocation4], 1 }
 0x14e   :  { %508 = vsyncpa [#allocation9], 1 }

</bundles_post_ra>
